<compile_context>
chip_gen: v5e
topology: v5e:2x2
jax: 0.10.0
libtpu: 0.0.40
codegen_flags: <defaults>
</compile_context>

<pallas_src>
import functools

import jax
import jax.numpy as jnp
from jax.experimental import pallas as pl
from jax.experimental.pallas import tpu as pltpu

EPS_NORM = 1e-12   # F.normalize eps
EPS_BN = 1e-5      # nn.BatchNorm1d eps


# ----------------------------------------------------------------------------
# Fused kernel: base head + all MultiHead heads (novel and novel_over).
# ----------------------------------------------------------------------------
def _fused_heads_kernel(feats_ref, wb_ref, w1_ref, b1_ref, g_ref, beta_ref,
                        w2_ref, b2_ref, ones_ref, proto_ref,
                        featsn_ref, logitsb_ref, z_ref, logits_ref):
    x = feats_ref[...]                                             # (B, F) f32

    # --- base head: normalize(feats) @ W_base^T (pre-transposed -> (F, Pb)) --
    inv_fn = 1.0 / jnp.maximum(
        jnp.sqrt(jnp.sum(x * x, axis=-1, keepdims=True)), EPS_NORM)
    fn = x * inv_fn
    featsn_ref[...] = fn
    logitsb_ref[...] = jnp.dot(fn, wb_ref[...],
                               preferred_element_type=jnp.float32)

    # --- all 2H projector heads at once --------------------------------------
    # Linear 1 for every head: (B, F) @ (F, 2H*hid)
    h = jnp.dot(x, w1_ref[...], preferred_element_type=jnp.float32) + b1_ref[...]

    # BatchNorm1d (training-mode, biased batch statistics, per column) fused
    # into a single scale/shift, followed by ReLU.
    mean = jnp.mean(h, axis=0, keepdims=True)
    var = jnp.mean((h - mean) * (h - mean), axis=0, keepdims=True)
    scale = g_ref[...] / jnp.sqrt(var + EPS_BN)
    shift = beta_ref[...] - mean * scale
    h = jnp.maximum(h * scale + shift, 0.0)

    # Linear 2: block-diagonal (2H*hid, 2H*proj) weight keeps heads independent
    # while remaining one lane-dense MXU matmul.
    z = jnp.dot(h, w2_ref[...], preferred_element_type=jnp.float32) + b2_ref[...]

    # Per-head L2 normalization: block-ones matmul broadcasts each head's
    # sum of squares across its own proj block (no in-kernel reshapes).
    ss = jnp.dot(z * z, ones_ref[...], preferred_element_type=jnp.float32)
    zn = z * (1.0 / jnp.maximum(jnp.sqrt(ss), EPS_NORM))
    z_ref[...] = zn

    # Prototype logits for every head: block-diagonal (2H*proj, H*Pn + H*Po).
    logits_ref[...] = jnp.dot(zn, proto_ref[...],
                              preferred_element_type=jnp.float32)


# ----------------------------------------------------------------------------
# Host-side one-time parameter packing (transpose + concat + block-diag).
# ----------------------------------------------------------------------------
def fuse_head_params(w_base, novel_params, over_params):
    def prep(p):
        w1, b1, g, bt, w2, b2, proto = (p["w1"], p["b1"], p["gamma"], p["beta"],
                                        p["w2"], p["b2"], p["proto"])
        H, hid, F = w1.shape
        proj = w2.shape[1]
        return dict(
            w1=jnp.transpose(w1, (2, 0, 1)).reshape(F, H * hid),   # (F, H*hid)
            b1=b1.reshape(1, H * hid),
            g=g.reshape(1, H * hid),
            beta=bt.reshape(1, H * hid),
            w2=jnp.transpose(w2, (0, 2, 1)),                       # (H, hid, proj)
            b2=b2.reshape(1, H * proj),
            proto=jnp.transpose(proto, (0, 2, 1)),                 # (H, proj, P)
            H=H, hid=hid, proj=proj, P=proto.shape[1], F=F)

    a, b = prep(novel_params), prep(over_params)
    assert (a["H"], a["hid"], a["proj"], a["F"]) == (b["H"], b["hid"], b["proj"], b["F"])
    H, hid, proj = a["H"], a["hid"], a["proj"]
    nh = 2 * H                               # novel heads then novel_over heads
    Dh, Dz = nh * hid, nh * proj
    Pn, Po = a["P"], b["P"]
    Dp = H * Pn + H * Po

    w1 = jnp.concatenate([a["w1"], b["w1"]], axis=1)               # (F, Dh)
    b1 = jnp.concatenate([a["b1"], b["b1"]], axis=1)
    g = jnp.concatenate([a["g"], b["g"]], axis=1)
    beta = jnp.concatenate([a["beta"], b["beta"]], axis=1)
    b2 = jnp.concatenate([a["b2"], b["b2"]], axis=1)               # (1, Dz)

    w2_blocks = jnp.concatenate([a["w2"], b["w2"]], axis=0)        # (2H, hid, proj)
    w2bd = jnp.zeros((Dh, Dz), jnp.float32)
    for k in range(nh):
        w2bd = w2bd.at[k * hid:(k + 1) * hid,
                       k * proj:(k + 1) * proj].set(w2_blocks[k])

    protobd = jnp.zeros((Dz, Dp), jnp.float32)
    col = 0
    for k in range(nh):
        pk = Pn if k < H else Po
        blk = a["proto"][k] if k < H else b["proto"][k - H]        # (proj, pk)
        protobd = protobd.at[k * proj:(k + 1) * proj, col:col + pk].set(blk)
        col += pk

    blockones = jnp.kron(jnp.eye(nh, dtype=jnp.float32),
                         jnp.ones((proj, proj), jnp.float32))      # (Dz, Dz)

    fused = (jnp.transpose(w_base),                                # (F, num_base)
             w1, b1, g, beta, w2bd, b2, blockones, protobd)
    meta = dict(num_heads=int(H), proj_dim=int(proj),
                p_novel=int(Pn), p_over=int(Po))
    return fused, meta


# ----------------------------------------------------------------------------
# Wrapper: one pallas_call, then layout plumbing back to (num_heads, B, ...).
# ----------------------------------------------------------------------------
@functools.partial(jax.jit,
                   static_argnames=("num_heads", "proj_dim", "p_novel", "p_over"))
def _fused_forward(feats, wb_t, w1, b1, g, beta, w2bd, b2, blockones, protobd,
                   *, num_heads, proj_dim, p_novel, p_over):
    B, F = feats.shape
    num_base = wb_t.shape[1]
    Dz = w2bd.shape[1]
    Dp = protobd.shape[1]

    inputs = (feats, wb_t, w1, b1, g, beta, w2bd, b2, blockones, protobd)
    out_shape = [
        jax.ShapeDtypeStruct((B, F), jnp.float32),          # feats_base
        jax.ShapeDtypeStruct((B, num_base), jnp.float32),   # logits_base
        jax.ShapeDtypeStruct((B, Dz), jnp.float32),         # zn slab (all heads)
        jax.ShapeDtypeStruct((B, Dp), jnp.float32),         # logits slab (all heads)
    ]
    # TODO(synk): for large B / feat_dim, tile the batch axis here (grid over
    # B blocks) and budget the tile against v7x's 64 MiB VMEM.
    feats_base, logits_base, z_cat, logits_cat = pl.pallas_call(
        _fused_heads_kernel,
        grid=(1,),
        in_specs=[pl.BlockSpec(a.shape, lambda i: (0, 0)) for a in inputs],
        out_specs=[pl.BlockSpec(s.shape, lambda i: (0, 0)) for s in out_shape],
        out_shape=out_shape,
        compiler_params=pltpu.CompilerParams(
            dimension_semantics=("arbitrary",)),
    )(*inputs)

    H, proj = num_heads, proj_dim
    z_all = z_cat.reshape(B, 2 * H, proj).transpose(1, 0, 2)         # (2H, B, proj)
    logits_novel = logits_cat[:, :H * p_novel].reshape(B, H, p_novel).transpose(1, 0, 2)
    logits_over = logits_cat[:, H * p_novel:].reshape(B, H, p_over).transpose(1, 0, 2)

    return {
        "feats": feats,
        "feats_base": feats_base,
        "logits_base": logits_base,
        "logits_novel": logits_novel,
        "proj_feats_novel": z_all[:H],
        "logits_novel_over": logits_over,
        "proj_feats_novel_over": z_all[H:],
    }


def multihead_model_forward(feats, fused_params, meta):
    """Equivalent of MultiHeadModel.forward_heads (batch_head=False)."""
    return _fused_forward(feats, *fused_params, **meta)


# ----------------------------------------------------------------------------
# Parameter construction (deterministic, synthetic init)
# ----------------------------------------------------------------------------
def make_multihead_params(key, num_heads, feat_dim, hidden_dim, proj_dim, num_protos):
    k1, k2, k3, k4, k5 = jax.random.split(key, 5)
    w1 = jax.random.normal(k1, (num_heads, hidden_dim, feat_dim), jnp.float32) * 0.05
    b1 = jax.random.normal(k2, (num_heads, 1, hidden_dim), jnp.float32) * 0.01
    gamma = jnp.ones((num_heads, 1, hidden_dim), jnp.float32)   # BN default weight=1
    beta = jnp.zeros((num_heads, 1, hidden_dim), jnp.float32)   # BN default bias=0
    w2 = jax.random.normal(k3, (num_heads, proj_dim, hidden_dim), jnp.float32) * 0.05
    b2 = jax.random.normal(k4, (num_heads, 1, proj_dim), jnp.float32) * 0.01
    proto = jax.random.normal(k5, (num_heads, num_protos, proj_dim), jnp.float32)
    # MultiHead.__init__ calls normalize_prototypes(): rows L2-normalized
    proto = proto / jnp.maximum(
        jnp.sqrt(jnp.sum(proto * proto, axis=-1, keepdims=True)), EPS_NORM)
    return {"w1": w1, "b1": b1, "gamma": gamma, "beta": beta,
            "w2": w2, "b2": b2, "proto": proto}


# ----------------------------------------------------------------------------
# Pure-JAX reference (for verification)
# ----------------------------------------------------------------------------
def multihead_ref(feats, p):
    def one_head(w1, b1, g, bt, w2, b2, proto):
        h = feats @ w1.T + b1
        mean = jnp.mean(h, axis=0, keepdims=True)
        var = jnp.mean((h - mean) ** 2, axis=0, keepdims=True)
        h = (h - mean) / jnp.sqrt(var + EPS_BN) * g + bt
        h = jnp.maximum(h, 0.0)
        z = h @ w2.T + b2
        zn = z / jnp.maximum(
            jnp.sqrt(jnp.sum(z * z, axis=-1, keepdims=True)), EPS_NORM)
        return zn @ proto.T, zn
    logits, z = jax.vmap(one_head)(p["w1"], p["b1"], p["gamma"], p["beta"],
                                   p["w2"], p["b2"], p["proto"])
    return logits, z


if __name__ == "__main__":
    # Small, module-consistent shapes
    B = 8            # batch
    FEAT = 32        # self.feat_dim (encoder output dim)
    HID = 64         # hidden_dim
    PROJ = 32        # proj_dim
    NUM_BASE = 16
    NUM_NOVEL = 16
    OVER = 3         # overcluster_factor
    NUM_HEADS = 2

    key = jax.random.PRNGKey(0)
    k_feat, k_base, k_nov, k_over = jax.random.split(key, 4)

    feats = jax.random.normal(k_feat, (B, FEAT), jnp.float32)
    w_base = jax.random.normal(k_base, (NUM_BASE, FEAT), jnp.float32) * 0.1
    novel_params = make_multihead_params(k_nov, NUM_HEADS, FEAT, HID, PROJ, NUM_NOVEL)
    over_params = make_multihead_params(k_over, NUM_HEADS, FEAT, HID, PROJ,
                                        NUM_NOVEL * OVER)

    fused, meta = fuse_head_params(w_base, novel_params, over_params)
    out = multihead_model_forward(feats, fused, meta)
    jax.block_until_ready(out)

    # Verify against pure-JAX reference
    fn_ref = feats / jnp.maximum(
        jnp.sqrt(jnp.sum(feats * feats, axis=-1, keepdims=True)), EPS_NORM)
    assert jnp.allclose(out["feats_base"], fn_ref, atol=1e-5)
    assert jnp.allclose(out["logits_base"], fn_ref @ w_base.T, atol=1e-4)
    ln_ref, zn_ref = multihead_ref(feats, novel_params)
    assert jnp.allclose(out["logits_novel"], ln_ref, atol=2e-4)
    assert jnp.allclose(out["proj_feats_novel"], zn_ref, atol=2e-4)
    lo_ref, zo_ref = multihead_ref(feats, over_params)
    assert jnp.allclose(out["logits_novel_over"], lo_ref, atol=2e-4)
    assert jnp.allclose(out["proj_feats_novel_over"], zo_ref, atol=2e-4)

    print("KERNEL_OK")
</pallas_src>

<mosaic_0001>
module attributes {stable_mosaic.version = 11 : i64} {
  func.func @_fused_heads_kernel(%arg0: i32, %arg1: memref<8x32xf32, #tpu.memory_space<vmem>>, %arg2: memref<32x16xf32, #tpu.memory_space<vmem>>, %arg3: memref<32x256xf32, #tpu.memory_space<vmem>>, %arg4: memref<1x256xf32, #tpu.memory_space<vmem>>, %arg5: memref<1x256xf32, #tpu.memory_space<vmem>>, %arg6: memref<1x256xf32, #tpu.memory_space<vmem>>, %arg7: memref<256x128xf32, #tpu.memory_space<vmem>>, %arg8: memref<1x128xf32, #tpu.memory_space<vmem>>, %arg9: memref<128x128xf32, #tpu.memory_space<vmem>>, %arg10: memref<128x128xf32, #tpu.memory_space<vmem>>, %arg11: memref<8x32xf32, #tpu.memory_space<vmem>>, %arg12: memref<8x16xf32, #tpu.memory_space<vmem>>, %arg13: memref<8x128xf32, #tpu.memory_space<vmem>>, %arg14: memref<8x128xf32, #tpu.memory_space<vmem>>) attributes {dimension_semantics = [#tpu.dimension_semantics<arbitrary>], iteration_bounds = array<i64: 1>, scalar_prefetch = 0 : i64, scratch_operands = 0 : i64, tpu.core_type = #tpu.core_type<tc>, window_params = [{pipeline_mode = #tpu.pipeline_mode<synchronous>, transform_indices = @transform_0, window_bounds = array<i64: 8, 32>}, {pipeline_mode = #tpu.pipeline_mode<synchronous>, transform_indices = @transform_1, window_bounds = array<i64: 32, 16>}, {pipeline_mode = #tpu.pipeline_mode<synchronous>, transform_indices = @transform_2, window_bounds = array<i64: 32, 256>}, {pipeline_mode = #tpu.pipeline_mode<synchronous>, transform_indices = @transform_3, window_bounds = array<i64: 1, 256>}, {pipeline_mode = #tpu.pipeline_mode<synchronous>, transform_indices = @transform_4, window_bounds = array<i64: 1, 256>}, {pipeline_mode = #tpu.pipeline_mode<synchronous>, transform_indices = @transform_5, window_bounds = array<i64: 1, 256>}, {pipeline_mode = #tpu.pipeline_mode<synchronous>, transform_indices = @transform_6, window_bounds = array<i64: 256, 128>}, {pipeline_mode = #tpu.pipeline_mode<synchronous>, transform_indices = @transform_7, window_bounds = array<i64: 1, 128>}, {pipeline_mode = #tpu.pipeline_mode<synchronous>, transform_indices = @transform_8, window_bounds = array<i64: 128, 128>}, {pipeline_mode = #tpu.pipeline_mode<synchronous>, transform_indices = @transform_9, window_bounds = array<i64: 128, 128>}, {pipeline_mode = #tpu.pipeline_mode<synchronous>, transform_indices = @transform_10, window_bounds = array<i64: 8, 32>}, {pipeline_mode = #tpu.pipeline_mode<synchronous>, transform_indices = @transform_11, window_bounds = array<i64: 8, 16>}, {pipeline_mode = #tpu.pipeline_mode<synchronous>, transform_indices = @transform_12, window_bounds = array<i64: 8, 128>}, {pipeline_mode = #tpu.pipeline_mode<synchronous>, transform_indices = @transform_13, window_bounds = array<i64: 8, 128>}]} {
    %c0 = arith.constant 0 : index
    %c0_0 = arith.constant 0 : index
    %0 = vector.load %arg1[%c0, %c0_0] : memref<8x32xf32, #tpu.memory_space<vmem>>, vector<8x32xf32>
    %1 = arith.mulf %0, %0 : vector<8x32xf32>
    %cst = arith.constant dense<0.000000e+00> : vector<8xf32>
    %2 = vector.multi_reduction <add>, %1, %cst [1] : vector<8x32xf32> to vector<8xf32>
    %3 = vector.shape_cast %2 : vector<8xf32> to vector<8x1xf32>
    %4 = math.sqrt %3 : vector<8x1xf32>
    %cst_1 = arith.constant 9.99999996E-13 : f32
    %5 = vector.broadcast %cst_1 : f32 to vector<8x1xf32>
    %6 = arith.maximumf %4, %5 : vector<8x1xf32>
    %cst_2 = arith.constant 1.000000e+00 : f32
    %7 = vector.broadcast %cst_2 : f32 to vector<8x1xf32>
    %8 = arith.divf %7, %6 : vector<8x1xf32>
    %9 = vector.broadcast %8 : vector<8x1xf32> to vector<8x32xf32>
    %10 = arith.mulf %0, %9 : vector<8x32xf32>
    %c0_3 = arith.constant 0 : index
    %c0_4 = arith.constant 0 : index
    %11 = vector.load %arg11[%c0_3, %c0_4] : memref<8x32xf32, #tpu.memory_space<vmem>>, vector<8x32xf32>
    tpu.vector_store %arg11[%c0_3, %c0_4], %10 {strides = array<i32>} : memref<8x32xf32, #tpu.memory_space<vmem>>, vector<8x32xf32>,
    %c0_5 = arith.constant 0 : index
    %c0_6 = arith.constant 0 : index
    %12 = vector.load %arg2[%c0_5, %c0_6] : memref<32x16xf32, #tpu.memory_space<vmem>>, vector<32x16xf32>
    %cst_7 = arith.constant dense<0.000000e+00> : vector<8x16xf32>
    %13 = tpu.matmul %10, %12, %cst_7 {dimension_numbers = #tpu.dot_dimension_numbers<[1], [0], [0], [1], [0, 0, 1, 1], [], []>} : vector<8x32xf32>, vector<32x16xf32>, vector<8x16xf32> -> vector<8x16xf32>
    %c0_8 = arith.constant 0 : index
    %c0_9 = arith.constant 0 : index
    %14 = vector.load %arg12[%c0_8, %c0_9] : memref<8x16xf32, #tpu.memory_space<vmem>>, vector<8x16xf32>
    tpu.vector_store %arg12[%c0_8, %c0_9], %13 {strides = array<i32>} : memref<8x16xf32, #tpu.memory_space<vmem>>, vector<8x16xf32>,
    %c0_10 = arith.constant 0 : index
    %c0_11 = arith.constant 0 : index
    %15 = vector.load %arg3[%c0_10, %c0_11] : memref<32x256xf32, #tpu.memory_space<vmem>>, vector<32x256xf32>
    %cst_12 = arith.constant dense<0.000000e+00> : vector<8x256xf32>
    %16 = tpu.matmul %0, %15, %cst_12 {dimension_numbers = #tpu.dot_dimension_numbers<[1], [0], [0], [1], [0, 0, 1, 1], [], []>} : vector<8x32xf32>, vector<32x256xf32>, vector<8x256xf32> -> vector<8x256xf32>
    %c0_13 = arith.constant 0 : index
    %c0_14 = arith.constant 0 : index
    %17 = vector.load %arg4[%c0_13, %c0_14] : memref<1x256xf32, #tpu.memory_space<vmem>>, vector<1x256xf32>
    %18 = vector.broadcast %17 : vector<1x256xf32> to vector<8x256xf32>
    %19 = arith.addf %16, %18 : vector<8x256xf32>
    %cst_15 = arith.constant dense<0.000000e+00> : vector<256xf32>
    %20 = vector.multi_reduction <add>, %19, %cst_15 [0] : vector<8x256xf32> to vector<256xf32>
    %21 = vector.shape_cast %20 : vector<256xf32> to vector<1x256xf32>
    %cst_16 = arith.constant 8.000000e+00 : f32
    %22 = vector.broadcast %cst_16 : f32 to vector<1x256xf32>
    %23 = arith.divf %21, %22 : vector<1x256xf32>
    %24 = vector.broadcast %23 : vector<1x256xf32> to vector<8x256xf32>
    %25 = arith.subf %19, %24 : vector<8x256xf32>
    %26 = vector.broadcast %23 : vector<1x256xf32> to vector<8x256xf32>
    %27 = arith.subf %19, %26 : vector<8x256xf32>
    %28 = arith.mulf %25, %27 : vector<8x256xf32>
    %cst_17 = arith.constant dense<0.000000e+00> : vector<256xf32>
    %29 = vector.multi_reduction <add>, %28, %cst_17 [0] : vector<8x256xf32> to vector<256xf32>
    %30 = vector.shape_cast %29 : vector<256xf32> to vector<1x256xf32>
    %cst_18 = arith.constant 8.000000e+00 : f32
    %31 = vector.broadcast %cst_18 : f32 to vector<1x256xf32>
    %32 = arith.divf %30, %31 : vector<1x256xf32>
    %c0_19 = arith.constant 0 : index
    %c0_20 = arith.constant 0 : index
    %33 = vector.load %arg5[%c0_19, %c0_20] : memref<1x256xf32, #tpu.memory_space<vmem>>, vector<1x256xf32>
    %cst_21 = arith.constant 9.99999974E-6 : f32
    %34 = vector.broadcast %cst_21 : f32 to vector<1x256xf32>
    %35 = arith.addf %32, %34 : vector<1x256xf32>
    %36 = math.sqrt %35 : vector<1x256xf32>
    %37 = arith.divf %33, %36 : vector<1x256xf32>
    %c0_22 = arith.constant 0 : index
    %c0_23 = arith.constant 0 : index
    %38 = vector.load %arg6[%c0_22, %c0_23] : memref<1x256xf32, #tpu.memory_space<vmem>>, vector<1x256xf32>
    %39 = arith.mulf %23, %37 : vector<1x256xf32>
    %40 = arith.subf %38, %39 : vector<1x256xf32>
    %41 = vector.broadcast %37 : vector<1x256xf32> to vector<8x256xf32>
    %42 = arith.mulf %19, %41 : vector<8x256xf32>
    %43 = vector.broadcast %40 : vector<1x256xf32> to vector<8x256xf32>
    %44 = arith.addf %42, %43 : vector<8x256xf32>
    %cst_24 = arith.constant 0.000000e+00 : f32
    %45 = vector.broadcast %cst_24 : f32 to vector<8x256xf32>
    %46 = arith.maximumf %44, %45 : vector<8x256xf32>
    %c0_25 = arith.constant 0 : index
    %c0_26 = arith.constant 0 : index
    %47 = vector.load %arg7[%c0_25, %c0_26] : memref<256x128xf32, #tpu.memory_space<vmem>>, vector<256x128xf32>
    %cst_27 = arith.constant dense<0.000000e+00> : vector<8x128xf32>
    %48 = tpu.matmul %46, %47, %cst_27 {dimension_numbers = #tpu.dot_dimension_numbers<[1], [0], [0], [1], [0, 0, 1, 1], [], []>} : vector<8x256xf32>, vector<256x128xf32>, vector<8x128xf32> -> vector<8x128xf32>
    %c0_28 = arith.constant 0 : index
    %c0_29 = arith.constant 0 : index
    %49 = vector.load %arg8[%c0_28, %c0_29] : memref<1x128xf32, #tpu.memory_space<vmem>>, vector<1x128xf32>
    %50 = vector.broadcast %49 : vector<1x128xf32> to vector<8x128xf32>
    %51 = arith.addf %48, %50 : vector<8x128xf32>
    %52 = arith.mulf %51, %51 : vector<8x128xf32>
    %c0_30 = arith.constant 0 : index
    %c0_31 = arith.constant 0 : index
    %53 = vector.load %arg9[%c0_30, %c0_31] : memref<128x128xf32, #tpu.memory_space<vmem>>, vector<128x128xf32>
    %cst_32 = arith.constant dense<0.000000e+00> : vector<8x128xf32>
    %54 = tpu.matmul %52, %53, %cst_32 {dimension_numbers = #tpu.dot_dimension_numbers<[1], [0], [0], [1], [0, 0, 1, 1], [], []>} : vector<8x128xf32>, vector<128x128xf32>, vector<8x128xf32> -> vector<8x128xf32>
    %55 = math.sqrt %54 : vector<8x128xf32>
    %cst_33 = arith.constant 9.99999996E-13 : f32
    %56 = vector.broadcast %cst_33 : f32 to vector<8x128xf32>
    %57 = arith.maximumf %55, %56 : vector<8x128xf32>
    %cst_34 = arith.constant 1.000000e+00 : f32
    %58 = vector.broadcast %cst_34 : f32 to vector<8x128xf32>
    %59 = arith.divf %58, %57 : vector<8x128xf32>
    %60 = arith.mulf %51, %59 : vector<8x128xf32>
    %c0_35 = arith.constant 0 : index
    %c0_36 = arith.constant 0 : index
    %61 = vector.load %arg13[%c0_35, %c0_36] : memref<8x128xf32, #tpu.memory_space<vmem>>, vector<8x128xf32>
    tpu.vector_store %arg13[%c0_35, %c0_36], %60 {strides = array<i32>} : memref<8x128xf32, #tpu.memory_space<vmem>>, vector<8x128xf32>,
    %c0_37 = arith.constant 0 : index
    %c0_38 = arith.constant 0 : index
    %62 = vector.load %arg10[%c0_37, %c0_38] : memref<128x128xf32, #tpu.memory_space<vmem>>, vector<128x128xf32>
    %cst_39 = arith.constant dense<0.000000e+00> : vector<8x128xf32>
    %63 = tpu.matmul %60, %62, %cst_39 {dimension_numbers = #tpu.dot_dimension_numbers<[1], [0], [0], [1], [0, 0, 1, 1], [], []>} : vector<8x128xf32>, vector<128x128xf32>, vector<8x128xf32> -> vector<8x128xf32>
    %c0_40 = arith.constant 0 : index
    %c0_41 = arith.constant 0 : index
    %64 = vector.load %arg14[%c0_40, %c0_41] : memref<8x128xf32, #tpu.memory_space<vmem>>, vector<8x128xf32>
    tpu.vector_store %arg14[%c0_40, %c0_41], %63 {strides = array<i32>} : memref<8x128xf32, #tpu.memory_space<vmem>>, vector<8x128xf32>,
    return
  }
  func.func @transform_0(%arg0: i32) -> (i32, i32) {
    %c0_i32 = arith.constant 0 : i32
    %c0_i32_0 = arith.constant 0 : i32
    %c0_i32_1 = arith.constant 0 : i32
    return %c0_i32, %c0_i32_0 : i32, i32
  }
  func.func @transform_1(%arg0: i32) -> (i32, i32) {
    %c0_i32 = arith.constant 0 : i32
    %c0_i32_0 = arith.constant 0 : i32
    %c0_i32_1 = arith.constant 0 : i32
    return %c0_i32, %c0_i32_0 : i32, i32
  }
  func.func @transform_2(%arg0: i32) -> (i32, i32) {
    %c0_i32 = arith.constant 0 : i32
    %c0_i32_0 = arith.constant 0 : i32
    %c0_i32_1 = arith.constant 0 : i32
    return %c0_i32, %c0_i32_0 : i32, i32
  }
  func.func @transform_3(%arg0: i32) -> (i32, i32) {
    %c0_i32 = arith.constant 0 : i32
    %c0_i32_0 = arith.constant 0 : i32
    %c0_i32_1 = arith.constant 0 : i32
    return %c0_i32, %c0_i32_0 : i32, i32
  }
  func.func @transform_4(%arg0: i32) -> (i32, i32) {
    %c0_i32 = arith.constant 0 : i32
    %c0_i32_0 = arith.constant 0 : i32
    %c0_i32_1 = arith.constant 0 : i32
    return %c0_i32, %c0_i32_0 : i32, i32
  }
  func.func @transform_5(%arg0: i32) -> (i32, i32) {
    %c0_i32 = arith.constant 0 : i32
    %c0_i32_0 = arith.constant 0 : i32
    %c0_i32_1 = arith.constant 0 : i32
    return %c0_i32, %c0_i32_0 : i32, i32
  }
  func.func @transform_6(%arg0: i32) -> (i32, i32) {
    %c0_i32 = arith.constant 0 : i32
    %c0_i32_0 = arith.constant 0 : i32
    %c0_i32_1 = arith.constant 0 : i32
    return %c0_i32, %c0_i32_0 : i32, i32
  }
  func.func @transform_7(%arg0: i32) -> (i32, i32) {
    %c0_i32 = arith.constant 0 : i32
    %c0_i32_0 = arith.constant 0 : i32
    %c0_i32_1 = arith.constant 0 : i32
    return %c0_i32, %c0_i32_0 : i32, i32
  }
  func.func @transform_8(%arg0: i32) -> (i32, i32) {
    %c0_i32 = arith.constant 0 : i32
    %c0_i32_0 = arith.constant 0 : i32
    %c0_i32_1 = arith.constant 0 : i32
    return %c0_i32, %c0_i32_0 : i32, i32
  }
  func.func @transform_9(%arg0: i32) -> (i32, i32) {
    %c0_i32 = arith.constant 0 : i32
    %c0_i32_0 = arith.constant 0 : i32
    %c0_i32_1 = arith.constant 0 : i32
    return %c0_i32, %c0_i32_0 : i32, i32
  }
  func.func @transform_10(%arg0: i32) -> (i32, i32) {
    %c0_i32 = arith.constant 0 : i32
    %c0_i32_0 = arith.constant 0 : i32
    %c0_i32_1 = arith.constant 0 : i32
    return %c0_i32, %c0_i32_0 : i32, i32
  }
  func.func @transform_11(%arg0: i32) -> (i32, i32) {
    %c0_i32 = arith.constant 0 : i32
    %c0_i32_0 = arith.constant 0 : i32
    %c0_i32_1 = arith.constant 0 : i32
    return %c0_i32, %c0_i32_0 : i32, i32
  }
  func.func @transform_12(%arg0: i32) -> (i32, i32) {
    %c0_i32 = arith.constant 0 : i32
    %c0_i32_0 = arith.constant 0 : i32
    %c0_i32_1 = arith.constant 0 : i32
    return %c0_i32, %c0_i32_0 : i32, i32
  }
  func.func @transform_13(%arg0: i32) -> (i32, i32) {
    %c0_i32 = arith.constant 0 : i32
    %c0_i32_0 = arith.constant 0 : i32
    %c0_i32_1 = arith.constant 0 : i32
    return %c0_i32, %c0_i32_0 : i32, i32
  }
}

</mosaic_0001>

<bundles_post_ra>
// kernel: _fused_forward.1
= control target key start
LH: loop header
LB: loop body
LE: loop exit
PB: predicated region body
PF: predicated region fallthrough
CT: control target
= control target key end

     0   :  { %19 = vsyncpa [#allocation3], 0  ;;  %s930_s0 = inlined_call_operand.vmem [shape: f32[8,32], index: 0, kind: input, shape index: {}]   ;;  %s931_s1 = inlined_call_operand.vmem [shape: f32[32,16], index: 1, kind: input, shape index: {}]   ;;  %s932_s2 = inlined_call_operand.hbm [shape: f32[32,256], index: 2, kind: input, shape index: {}]   ;;  %s933_s3 = inlined_call_operand.vmem [shape: f32[1,256], index: 3, kind: input, shape index: {}]   ;;  %s934_s4 = inlined_call_operand.vmem [shape: f32[1,256], index: 4, kind: input, shape index: {}]   ;;  %s935_s5 = inlined_call_operand.vmem [shape: f32[1,256], index: 5, kind: input, shape index: {}]   ;;  %s936_s6 = inlined_call_operand.hbm [shape: f32[256,128], index: 6, kind: input, shape index: {}]   ;;  %s937_s7 = inlined_call_operand.vmem [shape: f32[1,128], index: 7, kind: input, shape index: {}]   ;;  %s938_s8 = inlined_call_operand.hbm [shape: f32[128,128], index: 8, kind: input, shape index: {}]   ;;  %s939_s9 = inlined_call_operand.hbm [shape: f32[128,128], index: 9, kind: input, shape index: {}]   ;;  %s940_s10 = inlined_call_operand.hbm [shape: f32[8,32], index: 10, kind: output, shape index: {0}]   ;;  %s941_s11 = inlined_call_operand.hbm [shape: f32[8,16], index: 11, kind: output, shape index: {1}]   ;;  %s942_s12 = inlined_call_operand.vmem [shape: f32[8,128], index: 12, kind: output, shape index: {2}]   ;;  %s943_s13 = inlined_call_operand.vmem [shape: f32[8,128], index: 13, kind: output, shape index: {3}]  }
   0x1   :  { %20 = vsyncpa [#allocation6], 0 }
   0x2   :  { %21 = vsyncpa [#allocation9], 0 }
   0x3   :  { %22 = vsyncpa [#allocation4], 0  ;;  %s51_s27 = sshll.u32 %s936_s6, 4  ;;  %s52_s27 = int_to_ptr.hbm [resolvable:$true] %s51_s27 }
   0x4   :  { %23 = vsyncpa [#allocation12], 0  ;;  %s746_s28 = smov [#allocation5]   ;;  %s32_s15 = sshll.u32 %s932_s2, 4  ;;  %s33_s15 = int_to_ptr.hbm [resolvable:$true] %s32_s15 }
   0x5   :  { %s53_s29 = sshll.u32 %s746_s28, 4  ;;  %s747_s16 = smov 128   ;;  %s54_s29 = int_to_ptr.vmem [resolvable:$true] %s53_s29 }
   0x6   :  { %s748_s17 = smov 8   ;;  %s749_s18 = smov [#allocation2]  }
   0x7   :  { %59 = dma.hbm_to_vmem [thread:$0]  %s52_s27, 4096, %s54_s29, [#allocation6], %s747_s16, %s747_s16, %s748_s17  }
   0x8   :  { %s34_s19 = sshll.u32 %s749_s18, 4  ;;  %s750_s20 = smov 256   ;;  %s35_s19 = int_to_ptr.vmem [resolvable:$true] %s34_s19 }
   0x9   :  { %s751_s21 = smov 16   ;;  %s66_s23 = sshll.u32 %s938_s8, 4  ;;  %s67_s23 = int_to_ptr.hbm [resolvable:$true] %s66_s23 }
   0xa   :  { %40 = dma.hbm_to_vmem [thread:$0]  %s33_s15, 1024, %s35_s19, [#allocation3], %s750_s20, %s750_s20, %s751_s21  }
   0xb   :  { %s752_s24 = smov [#allocation7]   ;;  %s79_s28 = sshll.u32 %s939_s9, 4  ;;  %s80_s28 = int_to_ptr.hbm [resolvable:$true] %s79_s28 }
   0xc   :  { %s68_s25 = sshll.u32 %s752_s24, 4  ;;  %s753_s27 = smov [#allocation8]   ;;  %s69_s25 = int_to_ptr.vmem [resolvable:$true] %s68_s25 }
   0xd   :  { %74 = dma.hbm_to_vmem [thread:$0]  %s67_s23, 2048, %s69_s25, [#allocation6], %s747_s16, %s747_s16, %s748_s17  }
   0xe   :  { %s81_s29 = sshll.u32 %s753_s27, 4  ;;  %s82_s29 = int_to_ptr.vmem [resolvable:$true] %s81_s29 }
   0xf   :  { %87 = dma.hbm_to_vmem [thread:$0]  %s80_s28, 2048, %s82_s29, [#allocation9], %s747_s16, %s747_s16, %s748_s17  }
  0x10   :  { %736 = dma.done.wait [#allocation3], 1024  }
  0x11   :  { %737 = vsyncadd [#allocation3], 4294966272 }
  0x12   :  { %738 = dma.done.wait [#allocation6], 6144  }
  0x13   :  { %739 = vsyncadd [#allocation6], 4294961152 }
  0x14   :  { %740 = dma.done.wait [#allocation9], 2048  }
  0x15   :  { %741 = vsyncadd [#allocation9], 4294965248  ;;  %v175_v0 = vld [vmem:[#allocation2 + $0x30] sm:$0xff]  ;;  %v176_v1 = vld [vmem:[#allocation2 + $0x38] sm:$0xff]  ;;  %vm106_vm0 = vcmask 261120   ;;  %v754_v11 = vmov 8.0  }
  0x16   :  { %v173_v2 = vld [vmem:[#allocation2 + $0x20] sm:$0xff]  ;;  %198 = vmatpush.msra.mxu1 %v175_v0  ;;  %218 = vmatpush.msra.mxu2 %v176_v1  ;;  %v174_v3 = vld [vmem:[#allocation2 + $0x28] sm:$0xff]  ;;  %v171_v4 = vld [vmem:[#allocation2 + $0x10] sm:$0xff]  ;;  %576 = vrcp.f32 %v754_v11  ;;  %vm295_vm11 = vcmask 1040384   ;;  %s755_s24 = smov [#allocation10]   ;;  %s525_s28 = sshll.u32 %s940_s10, 4  ;;  %s526_s28 = int_to_ptr.hbm [resolvable:$true] %s525_s28 }
  0x17   :  { %v172_v5 = vld [vmem:[#allocation2 + $0x18] sm:$0xff]  ;;  %v842_v6 = vld [vmem:[%s930_s0] sm:$0xff]  ;;  %v170_v9 = vld [vmem:[#allocation2 + $0x8] sm:$0xff]  ;;  %s523_s25 = sshll.u32 %s755_s24, 4  ;;  %s756_s27 = smov [#allocation11]   ;;  %s524_s25 = int_to_ptr.vmem [resolvable:$true] %s523_s25 }
  0x18   :  { %199 = vmatpush.msra.mxu1 %v173_v2  ;;  %219 = vmatpush.msra.mxu2 %v174_v3  ;;  %v105_v7 = vmul.f32 %v842_v6, %v842_v6  ;;  %v169_v8 = vld [vmem:[#allocation2] sm:$0xff]  ;;  %v143_v35 = vld [vmem:[%s931_s1 + $0x18] sm:$0xff]  ;;  %v142_v36 = vld [vmem:[%s931_s1 + $0x10] sm:$0xff]  ;;  %s534_s29 = sshll.u32 %s756_s27, 4  ;;  %s536_s0 = sshll.u32 %s941_s11, 4  ;;  %s535_s29 = int_to_ptr.vmem [resolvable:$true] %s534_s29  ;;  %s537_s0 = int_to_ptr.hbm [resolvable:$true] %s536_s0 }
  0x19   :  { %v177_v13 = vld [vmem:[%s933_s3] sm:$0x3]  ;;  %159 = vmatpush.msra.mxu0 %v143_v35  ;;  %v353_v38 = vld [vmem:[#allocation5 + $0x78] sm:$0xff]  ;;  %v141_v42 = vld [vmem:[%s931_s1 + $0x8] sm:$0xff] }
  0x1a   :  { %200 = vmatpush.msra.mxu1 %v171_v4  ;;  %220 = vmatpush.msra.mxu2 %v172_v5  ;;  %v107_v10 = vsel %vm106_vm0, %v105_v7, 0.0  ;;  %v179_v16 = vperm.slane %v177_v13, 0  ;;  %v180_v23 = vperm.slane %v177_v13, 1  ;;  %v352_v43 = vld [vmem:[#allocation5 + $0x70] sm:$0xff]  ;;  %v351_v46 = vld [vmem:[#allocation5 + $0x68] sm:$0xff]  ;;  %v140_v49 = vld [vmem:[%s931_s1] sm:$0xff] }
  0x1b   :  { %108 = vadd.xlane.f32.xlu0 %v107_v10  ;;  %374 = vmatpush.msra.mxu3 %v353_v38  ;;  %v369_v51 = vld [vmem:[#allocation5 + $0xf8] sm:$0xff]  ;;  %v350_v52 = vld [vmem:[#allocation5 + $0x60] sm:$0xff]  ;;  %v368_v57 = vld [vmem:[#allocation5 + $0xf0] sm:$0xff] }
  0x1c   :  { %201 = vmatpush.msra.mxu1 %v169_v8  ;;  %221 = vmatpush.msra.mxu2 %v170_v9  ;;  %v577_v12 = vpop.eup %576  ;;  %v349_v58 = vld [vmem:[#allocation5 + $0x58] sm:$0xff]  ;;  %v367_v61 = vld [vmem:[#allocation5 + $0xe8] sm:$0xff]  ;;  %v348_v62 = vld [vmem:[#allocation5 + $0x50] sm:$0xff] }
  0x1d   :  { %562 = vmatmul.msk.f32.vlgmr.msra.gmra.mxu1 %vm106_vm0, %v842_v6  ;;  %563 = vmatmul.msk.f32.vlgmr.msra.gmra.mxu2 %vm106_vm0, %v842_v6  ;;  %v239_v15 = vmul.f32 8.0, %v577_v12  ;;  %vm243_vm1 = vweird.f32 %v577_v12  ;;  %v366_v1 = vld [vmem:[#allocation5 + $0xe0] sm:$0xff]  ;;  %v347_v2 = vld [vmem:[#allocation5 + $0x48] sm:$0xff]  ;;  %v365_v5 = vld [vmem:[#allocation5 + $0xd8] sm:$0xff] }
  0x1e   :  { %160 = vmatpush.msra.mxu0 %v142_v36  ;;  %375 = vmatpush.msra.mxu3 %v352_v43  ;;  %v346_v7 = vld [vmem:[#allocation5 + $0x40] sm:$0xff]  ;;  %v364_v11 = vld [vmem:[#allocation5 + $0xd0] sm:$0xff]  ;;  %v341_v38 = vld [vmem:[#allocation5 + $0x18] sm:$0xff] }
  0x1f   :  { %v240_v18 = vsub.f32 1.0, %v239_v15  ;;  %v340_v43 = vld [vmem:[#allocation5 + $0x10] sm:$0xff] }
  0x20   :  { %161 = vmatpush.msra.mxu0 %v141_v42  ;;  %376 = vmatpush.msra.mxu3 %v351_v46 }
  0x21   :  { %v241_v24 = vmul.f32 %v577_v12, %v240_v18  ;;  %v363_v18 = vld [vmem:[#allocation5 + $0xc8] sm:$0xff] }
  0x22   :  { %162 = vmatpush.msra.mxu0 %v140_v49  ;;  %377 = vmatpush.msra.mxu3 %v350_v52  ;;  %v339_v49 = vld [vmem:[#allocation5 + $0x8] sm:$0xff]  ;;  %v338_v52 = vld [vmem:[#allocation5] sm:$0xff] }
  0x23   :  { %v242_v31 = vadd.f32 %v577_v12, %v241_v24  ;;  %v362_v24 = vld [vmem:[#allocation5 + $0xc0] sm:$0xff] }
  0x24   :  { %394 = vmatpush.msrb.mxu0 %v369_v51  ;;  %378 = vmatpush.msra.mxu3 %v349_v58  ;;  %v358_v51 = vld [vmem:[#allocation5 + $0xa0] sm:$0xff]  ;;  %v355_v58 = vld [vmem:[#allocation5 + $0x88] sm:$0xff] }
  0x25   :  { %v871_v44 = vsel %vm243_vm1, %v577_v12, %v242_v31  ;;  %v345_v12 = vld [vmem:[#allocation5 + $0x38] sm:$0xff]  ;;  %vm167_vm1 = vcmask 130048  }
  0x26   :  { %395 = vmatpush.msrb.mxu0 %v368_v57  ;;  %379 = vmatpush.msra.mxu3 %v348_v62 }
  0x28   :  { %396 = vmatpush.msrb.mxu0 %v367_v61  ;;  %380 = vmatpush.msra.mxu3 %v347_v2 }
  0x2a   :  { %397 = vmatpush.msrb.mxu0 %v366_v1  ;;  %381 = vmatpush.msra.mxu3 %v346_v7 }
  0x2c   :  { %398 = vmatpush.msrb.mxu0 %v365_v5  ;;  %382 = vmatpush.msra.mxu3 %v345_v12 }
  0x2e   :  { %399 = vmatpush.msrb.mxu0 %v364_v11 }
  0x30   :  { %400 = vmatpush.msrb.mxu0 %v363_v18 }
  0x32   :  { %401 = vmatpush.msrb.mxu0 %v362_v24 }
  0x8e   :  { %v109_v14 = vpop.xlane.xlu0 %108 }
  0x8f   :  { %578 = vrsqrt.f32 %v109_v14  ;;  %vm117_vm2 = vcmp.eq.f32.partialorder %v109_v14, inf  ;;  %v120_v41 = vand.u32 2147483648, %v109_v14  ;;  %vm119_vm3 = vcmp.eq.f32.partialorder %v109_v14, 0.0 }
  0x95   :  { %v579_v19 = vpop.eup %578 }
  0x96   :  { %v111_v21 = vmul.f32 %v579_v19, %v109_v14 }
  0x98   :  { %v112_v25 = vmul.f32 %v579_v19, %v111_v21 }
  0x9a   :  { %v203_v17 = vpop.f32.mrf.mxu1  ;;  %v113_v28 = vmul.f32 0.5, %v112_v25  ;;  %v343_v25 = vld [vmem:[#allocation5 + $0x28] sm:$0xff] }
  0x9b   :  { %v854_v20 = vadd.f32 %v203_v17, %v179_v16 }
  0x9c   :  { %v114_v32 = vsub.f32 1.5, %v113_v28 }
  0x9d   :  { %v226_v22 = vrot.slane %v854_v20, 4 }
  0x9e   :  { %v115_v37 = vmul.f32 %v579_v19, %v114_v32  ;;  %v344_v19 = vld [vmem:[#allocation5 + $0x30] sm:$0xff]  ;;  %v361_v32 = vld [vmem:[#allocation5 + $0xb8] sm:$0xff] }
  0x9f   :  { %v227_v26 = vadd.f32 %v226_v22, %v854_v20  ;;  %383 = vmatpush.msra.mxu3 %v344_v19  ;;  %402 = vmatpush.msrb.mxu0 %v361_v32 }
  0xa0   :  { %v223_v27 = vpop.f32.mrf.mxu2  ;;  %v116_v45 = vmul.f32 %v115_v37, %v109_v14  ;;  %v360_v37 = vld [vmem:[#allocation5 + $0xb0] sm:$0xff] }
  0xa1   :  { %v228_v29 = vrot.slane %v227_v26, 2  ;;  %v858_v30 = vadd.f32 %v223_v27, %v180_v23  ;;  %384 = vmatpush.msra.mxu3 %v343_v25  ;;  %403 = vmatpush.msrb.mxu0 %v360_v37 }
  0xa2   :  { %v118_v50 = vsel %vm117_vm2, %v109_v14, %v116_v45 }
  0xa3   :  { %v229_v33 = vadd.f32 %v228_v29, %v227_v26  ;;  %v232_v34 = vrot.slane %v858_v30, 4  ;;  %v121_v55 = vsel %vm119_vm3, %v120_v41, %v118_v50 }
  0xa4   :  { %v122_v56 = vmax.f32 %v121_v55, 1e-12  ;;  %v357_v55 = vld [vmem:[#allocation5 + $0x98] sm:$0xff] }
  0xa5   :  { %v230_v39 = vrot.slane %v229_v33, 1  ;;  %v233_v40 = vadd.f32 %v232_v34, %v858_v30 }
  0xa6   :  { %580 = vrcp.f32 %v122_v56  ;;  %vm128_vm4 = vweird.f32 %v122_v56  ;;  %v132_v16 = vand.u32 2147483647, %v122_v56  ;;  %v134_v17 = vand.u32 2147483648, %v122_v56 }
  0xa7   :  { %v231_v47 = vadd.f32 %v230_v39, %v229_v33  ;;  %v234_v48 = vrot.slane %v233_v40, 2  ;;  %v342_v33 = vld [vmem:[#allocation5 + $0x20] sm:$0xff] }
  0xa8   :  { %v135_v31 = vor.u32 1.1754944e-38, %v134_v17  ;;  %vm133_vm7 = vcmp.eq.f32.partialorder %v132_v16, 8.507059e+37  ;;  %385 = vmatpush.msra.mxu3 %v342_v33 }
  0xa9   :  { %v877_v53 = vmul.f32 %v871_v44, %v231_v47  ;;  %v235_v54 = vadd.f32 %v234_v48, %v233_v40  ;;  %v359_v48 = vld [vmem:[#allocation5 + $0xa8] sm:$0xff] }
  0xaa   :  { %386 = vmatpush.msra.mxu3 %v341_v38  ;;  %404 = vmatpush.msrb.mxu0 %v359_v48  ;;  %v430_v48 = vld [vmem:[#allocation7 + $0x78] sm:$0xff] }
  0xab   :  { %v247_v59 = vsub.f32 %v854_v20, %v877_v53  ;;  %v236_v60 = vrot.slane %v235_v54, 1  ;;  %431 = vmatpush.msrb.mxu1 %v430_v48 }
  0xac   :  { %v581_v10 = vpop.eup %580  ;;  %387 = vmatpush.msra.mxu3 %v340_v43  ;;  %405 = vmatpush.msrb.mxu0 %v358_v51  ;;  %v426_v51 = vld [vmem:[#allocation7 + $0x58] sm:$0xff] }
  0xad   :  { %v249_v63 = vmul.f32 %v247_v59, %v247_v59  ;;  %v237_v0 = vadd.f32 %v236_v60, %v235_v54  ;;  %v124_v15 = vmul.f32 %v581_v10, %v122_v56  ;;  %vm129_vm5 = vweird.f32 %v581_v10  ;;  %v356_v56 = vld [vmem:[#allocation5 + $0x90] sm:$0xff]  ;;  %v354_v60 = vld [vmem:[#allocation5 + $0x80] sm:$0xff] }
  0xae   :  { %vm887_vm6 = vmor %vm128_vm4, %vm129_vm5  ;;  %388 = vmatpush.msra.mxu3 %v339_v49  ;;  %406 = vmatpush.msrb.mxu0 %v357_v55  ;;  %v429_v49 = vld [vmem:[#allocation7 + $0x70] sm:$0xff] }
  0xaf   :  { %v251_v3 = vrot.slane %v249_v63, 4  ;;  %v882_v4 = vmul.f32 %v871_v44, %v237_v0  ;;  %v125_v23 = vsub.f32 1.0, %v124_v15  ;;  %432 = vmatpush.msrb.mxu1 %v429_v49 }
  0xb0   :  { %389 = vmatpush.msra.mxu3 %v338_v52  ;;  %407 = vmatpush.msrb.mxu0 %v356_v56  ;;  %v424_v52 = vld [vmem:[#allocation7 + $0x48] sm:$0xff] }
  0xb1   :  { %v252_v8 = vadd.f32 %v251_v3, %v249_v63  ;;  %v248_v9 = vsub.f32 %v858_v30, %v882_v4  ;;  %v126_v28 = vmul.f32 %v581_v10, %v125_v23  ;;  %v420_v56 = vld [vmem:[#allocation7 + $0x28] sm:$0xff] }
  0xb2   :  { %408 = vmatpush.msrb.mxu0 %v355_v58  ;;  %v418_v58 = vld [vmem:[#allocation7 + $0x18] sm:$0xff] }
  0xb3   :  { %v253_v13 = vrot.slane %v252_v8, 2  ;;  %v250_v14 = vmul.f32 %v248_v9, %v248_v9  ;;  %v127_v36 = vadd.f32 %v581_v10, %v126_v28 }
  0xb4   :  { %409 = vmatpush.msrb.mxu0 %v354_v60  ;;  %v416_v60 = vld [vmem:[#allocation7 + $0x8] sm:$0xff] }
  0xb5   :  { %v254_v21 = vadd.f32 %v253_v13, %v252_v8  ;;  %v257_v22 = vrot.slane %v250_v14, 4  ;;  %v131_v41 = vsel %vm887_vm6, %v581_v10, %v127_v36 }
  0xb6   :  { %v136_v42 = vsel %vm133_vm7, %v135_v31, %v131_v41 }
  0xb7   :  { %v255_v26 = vrot.slane %v254_v21, 1  ;;  %v258_v27 = vadd.f32 %v257_v22, %v250_v14  ;;  %v138_v47 = vmul.f32 %v136_v42, %v842_v6 }
  0xb9   :  { %v256_v34 = vadd.f32 %v255_v26, %v254_v21  ;;  %v259_v35 = vrot.slane %v258_v27, 2  ;;  %561 = vmatmul.msk.f32.vlgmr.msra.gmra.mxu0 %vm106_vm0, %v138_v47  ;;  %139 = vst.msk [vmem:[#allocation10] sm:$0xff] %vm106_vm0, %v138_v47  ;;  %v265_v26 = vld [vmem:[%s934_s4] sm:$0x3] }
  0xba   :  { %528 = dma.vmem_to_hbm [thread:$0]  %s524_s25, 128, %s526_s28, [#allocation4]  }
  0xbb   :  { %v263_v39 = vmul.f32 %v256_v34, %v871_v44  ;;  %v260_v40 = vadd.f32 %v259_v35, %v258_v27  ;;  %v313_v35 = vld [vmem:[%s935_s5] sm:$0x3] }
  0xbd   :  { %v266_v45 = vadd.f32 1e-05, %v263_v39  ;;  %v261_v46 = vrot.slane %v260_v40, 1 }
  0xbf   :  { %v262_v50 = vadd.f32 %v261_v46, %v260_v40  ;;  %582 = vrsqrt.f32 %v266_v45  ;;  %vm275_vm8 = vcmp.eq.f32.partialorder %v266_v45, inf  ;;  %v278_v13 = vand.u32 2147483648, %v266_v45 }
  0xc0   :  { %vm277_vm12 = vcmp.eq.f32.partialorder %v266_v45, 0.0 }
  0xc1   :  { %v264_v54 = vmul.f32 %v262_v50, %v871_v44  ;;  %v427_v50 = vld [vmem:[#allocation7 + $0x60] sm:$0xff] }
  0xc3   :  { %v267_v6 = vadd.f32 1e-05, %v264_v54  ;;  %v422_v54 = vld [vmem:[#allocation7 + $0x38] sm:$0xff] }
  0xc5   :  { %v583_v57 = vpop.eup %582  ;;  %584 = vrsqrt.f32 %v267_v6  ;;  %vm287_vm9 = vcmp.eq.f32.partialorder %v267_v6, inf  ;;  %v290_v10 = vand.u32 2147483648, %v267_v6  ;;  %vm289_vm10 = vcmp.eq.f32.partialorder %v267_v6, 0.0 }
  0xc6   :  { %v269_v59 = vmul.f32 %v583_v57, %v266_v45 }
  0xc8   :  { %v270_v61 = vmul.f32 %v583_v57, %v269_v59  ;;  %v417_v59 = vld [vmem:[#allocation7 + $0x10] sm:$0xff] }
  0xca   :  { %v271_v62 = vmul.f32 0.5, %v270_v61  ;;  %v415_v61 = vld [vmem:[#allocation7] sm:$0xff] }
  0xcb   :  { %v585_v63 = vpop.eup %584 }
  0xcc   :  { %v272_v0 = vsub.f32 1.5, %v271_v62  ;;  %v281_v44 = vmul.f32 %v585_v63, %v267_v6  ;;  %v575_v62 = vld [vmem:[%s937_s7] ss:$0 sm:$0xff] }
  0xce   :  { %v282_v1 = vmul.f32 %v585_v63, %v281_v44  ;;  %v273_v2 = vmul.f32 %v583_v57, %v272_v0  ;;  %v419_v57 = vld [vmem:[#allocation7 + $0x20] sm:$0xff] }
  0xd0   :  { %v283_v3 = vmul.f32 0.5, %v282_v1  ;;  %v274_v7 = vmul.f32 %v273_v2, %v266_v45 }
  0xd2   :  { %v284_v5 = vsub.f32 1.5, %v283_v3  ;;  %v276_v11 = vsel %vm275_vm8, %v266_v45, %v274_v7  ;;  %v496_v3 = vld [vmem:[#allocation8 + $0x78] sm:$0xff]  ;;  %v494_v7 = vld [vmem:[#allocation8 + $0x68] sm:$0xff] }
  0xd3   :  { %v279_v16 = vsel %vm277_vm12, %v278_v13, %v276_v11  ;;  %497 = vmatpush.msrb.mxu2 %v496_v3  ;;  %v490_v11 = vld [vmem:[#allocation8 + $0x48] sm:$0xff]  ;;  %v488_v13 = vld [vmem:[#allocation8 + $0x38] sm:$0xff] }
  0xd4   :  { %v285_v8 = vmul.f32 %v585_v63, %v284_v5  ;;  %v495_v5 = vld [vmem:[#allocation8 + $0x70] sm:$0xff] }
  0xd5   :  { %498 = vmatpush.msrb.mxu2 %v495_v5 }
  0xd6   :  { %v286_v9 = vmul.f32 %v285_v8, %v267_v6  ;;  %v493_v8 = vld [vmem:[#allocation8 + $0x60] sm:$0xff] }
  0xd7   :  { %499 = vmatpush.msrb.mxu2 %v494_v7 }
  0xd8   :  { %v288_v12 = vsel %vm287_vm9, %v267_v6, %v286_v9  ;;  %v421_v6 = vld [vmem:[#allocation7 + $0x30] sm:$0xff]  ;;  %v492_v9 = vld [vmem:[#allocation8 + $0x58] sm:$0xff] }
  0xd9   :  { %v291_v14 = vsel %vm289_vm10, %v290_v10, %v288_v12  ;;  %500 = vmatpush.msrb.mxu2 %v493_v8  ;;  %v491_v10 = vld [vmem:[#allocation8 + $0x50] sm:$0xff]  ;;  %v489_v12 = vld [vmem:[#allocation8 + $0x40] sm:$0xff] }
  0xda   :  { %v294_v15 = vrot.slane %v291_v14, 7  ;;  %v487_v14 = vld [vmem:[#allocation8 + $0x30] sm:$0xff] }
  0xdb   :  { %501 = vmatpush.msrb.mxu2 %v492_v9 }
  0xdc   :  { %v296_v17 = vsel %vm295_vm11, %v279_v16, %v294_v15  ;;  %v486_v15 = vld [vmem:[#allocation8 + $0x28] sm:$0xff] }
  0xdd   :  { %586 = vrcp.f32 %v296_v17  ;;  %v309_v22 = vand.u32 2147483648, %v296_v17  ;;  %v307_v24 = vand.u32 2147483647, %v296_v17  ;;  %vm303_vm14 = vweird.f32 %v296_v17  ;;  %502 = vmatpush.msrb.mxu2 %v491_v10 }
  0xdf   :  { %v310_v27 = vor.u32 1.1754944e-38, %v309_v22  ;;  %vm308_vm0 = vcmp.eq.f32.partialorder %v307_v24, 8.507059e+37  ;;  %503 = vmatpush.msrb.mxu2 %v490_v11  ;;  %v481_v24 = vld [vmem:[#allocation8] sm:$0xff] }
  0xe1   :  { %504 = vmatpush.msrb.mxu2 %v489_v12 }
  0xe3   :  { %v587_v18 = vpop.eup %586  ;;  %505 = vmatpush.msrb.mxu2 %v488_v13 }
  0xe4   :  { %v299_v19 = vmul.f32 %v587_v18, %v296_v17  ;;  %vm304_vm13 = vweird.f32 %v587_v18  ;;  %v485_v17 = vld [vmem:[#allocation8 + $0x20] sm:$0xff] }
  0xe5   :  { %vm305_vm15 = vmor %vm303_vm14, %vm304_vm13  ;;  %506 = vmatpush.msrb.mxu2 %v487_v14 }
  0xe6   :  { %v300_v21 = vsub.f32 1.0, %v299_v19  ;;  %v483_v19 = vld [vmem:[#allocation8 + $0x10] sm:$0xff] }
  0xe7   :  { %507 = vmatpush.msrb.mxu2 %v486_v15 }
  0xe8   :  { %v301_v23 = vmul.f32 %v587_v18, %v300_v21  ;;  %v482_v21 = vld [vmem:[#allocation8 + $0x8] sm:$0xff] }
  0xe9   :  { %508 = vmatpush.msrb.mxu2 %v485_v17 }
  0xea   :  { %v302_v25 = vadd.f32 %v587_v18, %v301_v23 }
  0xec   :  { %v306_v28 = vsel %vm305_vm15, %v587_v18, %v302_v25  ;;  %v484_v18 = vld [vmem:[#allocation8 + $0x18] sm:$0xff] }
  0xed   :  { %v311_v29 = vsel %vm308_vm0, %v310_v27, %v306_v28  ;;  %509 = vmatpush.msrb.mxu2 %v484_v18 }
  0xee   :  { %v312_v31 = vmul.f32 %v311_v29, %v265_v26 }
  0xef   :  { %510 = vmatpush.msrb.mxu2 %v483_v19 }
  0xf0   :  { %v315_v32 = vperm.slane %v312_v31, 0  ;;  %v316_v33 = vperm.slane %v312_v31, 1 }
  0xf1   :  { %511 = vmatpush.msrb.mxu2 %v482_v21 }
  0xf2   :  { %v320_v34 = vmul.f32 %v316_v33, %v882_v4  ;;  %v319_v36 = vmul.f32 %v315_v32, %v877_v53  ;;  %v327_v40 = vmul.f32 %v315_v32, %v854_v20  ;;  %v328_v42 = vmul.f32 %v316_v33, %v858_v30  ;;  %v428_v53 = vld [vmem:[#allocation7 + $0x68] sm:$0xff]  ;;  %v425_v20 = vld [vmem:[#allocation7 + $0x50] sm:$0xff]  ;;  %v423_v30 = vld [vmem:[#allocation7 + $0x40] sm:$0xff] }
  0xf3   :  { %433 = vmatpush.msrb.mxu1 %v428_v53  ;;  %512 = vmatpush.msrb.mxu2 %v481_v24 }
  0xf4   :  { %v323_v37 = vrot.slane %v320_v34, 7 }
  0xf5   :  { %434 = vmatpush.msrb.mxu1 %v427_v50 }
  0xf6   :  { %v324_v38 = vsel %vm295_vm11, %v319_v36, %v323_v37 }
  0xf7   :  { %v326_v39 = vsub.f32 %v313_v35, %v324_v38  ;;  %435 = vmatpush.msrb.mxu1 %v426_v51 }
  0xf9   :  { %v330_v41 = vperm.slane %v326_v39, 0  ;;  %v331_v43 = vperm.slane %v326_v39, 1  ;;  %436 = vmatpush.msrb.mxu1 %v425_v20 }
  0xfb   :  { %v334_v45 = vadd.f32 %v330_v41, %v327_v40  ;;  %v335_v46 = vadd.f32 %v331_v43, %v328_v42  ;;  %437 = vmatpush.msrb.mxu1 %v424_v52 }
  0xfd   :  { %v336_v47 = vmax.f32 %v334_v45, 0.0  ;;  %v337_v4 = vmax.f32 %v335_v46, 0.0  ;;  %438 = vmatpush.msrb.mxu1 %v423_v30 }
  0xff   :  { %390 = vmatmul.f32.vlgmr.msra.gmra.mxu3 %v336_v47  ;;  %410 = vmatmul.f32.vlgmr.msrb.gmra.mxu0 %v337_v4 }
 0x100   :  { %439 = vmatpush.msrb.mxu1 %v422_v54 }
 0x102   :  { %440 = vmatpush.msrb.mxu1 %v421_v6 }
 0x104   :  { %441 = vmatpush.msrb.mxu1 %v420_v56 }
 0x106   :  { %442 = vmatpush.msrb.mxu1 %v419_v57 }
 0x108   :  { %443 = vmatpush.msrb.mxu1 %v418_v58 }
 0x10a   :  { %444 = vmatpush.msrb.mxu1 %v417_v59 }
 0x10c   :  { %445 = vmatpush.msrb.mxu1 %v416_v60 }
 0x10e   :  { %446 = vmatpush.msrb.mxu1 %v415_v61 }
 0x136   :  { %v164_v55 = vpop.f32.mrf.mxu0 }
 0x137   :  { %168 = vst.msk [vmem:[#allocation11] sm:$0xff] %vm167_vm1, %v164_v55 }
 0x138   :  { %539 = dma.vmem_to_hbm [thread:$0]  %s535_s29, 128, %s537_s0, [#allocation12]  }
 0x17c   :  { %v411_v44 = vpop.f32.mrf.mxu0 }
 0x182   :  { %v391_v63 = vpop.f32.mrf.mxu3 }
 0x183   :  { %v392_v0 = vadd.f32 %v575_v62, %v391_v63 }
 0x185   :  { %v913_v1 = vadd.f32 %v411_v44, %v392_v0 }
 0x187   :  { %v414_v2 = vmul.f32 %v913_v1, %v913_v1 }
 0x189   :  { %447 = vmatmul.f32.vlgmr.msrb.gmra.mxu1 %v414_v2 }
 0x206   :  { %v448_v16 = vpop.f32.mrf.mxu1 }
 0x207   :  { %588 = vrsqrt.f32 %v448_v16  ;;  %vm458_vm2 = vcmp.eq.f32.partialorder %v448_v16, inf  ;;  %v461_v31 = vand.u32 2147483648, %v448_v16  ;;  %vm460_vm3 = vcmp.eq.f32.partialorder %v448_v16, 0.0 }
 0x20d   :  { %v589_v22 = vpop.eup %588 }
 0x20e   :  { %v452_v23 = vmul.f32 %v589_v22, %v448_v16 }
 0x210   :  { %v453_v25 = vmul.f32 %v589_v22, %v452_v23 }
 0x212   :  { %v454_v26 = vmul.f32 0.5, %v453_v25 }
 0x214   :  { %v455_v27 = vsub.f32 1.5, %v454_v26 }
 0x216   :  { %v456_v28 = vmul.f32 %v589_v22, %v455_v27 }
 0x218   :  { %v457_v29 = vmul.f32 %v456_v28, %v448_v16 }
 0x21a   :  { %v459_v32 = vsel %vm458_vm2, %v448_v16, %v457_v29 }
 0x21b   :  { %v462_v33 = vsel %vm460_vm3, %v461_v31, %v459_v32 }
 0x21c   :  { %v463_v34 = vmax.f32 %v462_v33, 1e-12 }
 0x21e   :  { %590 = vrcp.f32 %v463_v34  ;;  %v475_v38 = vand.u32 2147483648, %v463_v34  ;;  %v473_v40 = vand.u32 2147483647, %v463_v34  ;;  %vm469_vm5 = vweird.f32 %v463_v34 }
 0x220   :  { %v476_v42 = vor.u32 1.1754944e-38, %v475_v38  ;;  %vm474_vm7 = vcmp.eq.f32.partialorder %v473_v40, 8.507059e+37 }
 0x224   :  { %v591_v35 = vpop.eup %590 }
 0x225   :  { %v465_v36 = vmul.f32 %v591_v35, %v463_v34  ;;  %vm470_vm4 = vweird.f32 %v591_v35 }
 0x226   :  { %vm471_vm6 = vmor %vm469_vm5, %vm470_vm4 }
 0x227   :  { %v466_v37 = vsub.f32 1.0, %v465_v36 }
 0x229   :  { %v467_v39 = vmul.f32 %v591_v35, %v466_v37 }
 0x22b   :  { %v468_v41 = vadd.f32 %v591_v35, %v467_v39 }
 0x22d   :  { %v472_v43 = vsel %vm471_vm6, %v591_v35, %v468_v41 }
 0x22e   :  { %v477_v45 = vsel %vm474_vm7, %v476_v42, %v472_v43 }
 0x22f   :  { %v479_v46 = vmul.f32 %v477_v45, %v913_v1 }
 0x231   :  { %480 = vst [vmem:[%s942_s12] sm:$0xff] %v479_v46  ;;  %513 = vmatmul.f32.vlgmr.msrb.gmra.mxu2 %v479_v46 }
 0x2b4   :  { %v514_v47 = vpop.f32.mrf.mxu2 }
 0x2b5   :  { %517 = vst [vmem:[%s943_s13] sm:$0xff] %v514_v47 }
 0x2b6   :  { %742 = dma.done.wait [#allocation4], 128  }
 0x2b7   :  { %743 = vsyncadd [#allocation4], 4294967168 }
 0x2b8   :  { %744 = dma.done.wait [#allocation12], 128  }
 0x2b9   :  { %745 = vsyncadd [#allocation12], 4294967168 }
 0x2ba   :  { %556 = vsyncpa [#allocation3], 1 }
 0x2bb   :  { %557 = vsyncpa [#allocation6], 1 }
 0x2bc   :  { %558 = vsyncpa [#allocation9], 1 }
 0x2bd   :  { %559 = vsyncpa [#allocation4], 1 }
 0x2be   :  { %560 = vsyncpa [#allocation12], 1 }

</bundles_post_ra>
